<compile_context>
chip_gen: v5e
topology: v5e:2x2
jax: 0.10.0
libtpu: 0.0.40
codegen_flags: <defaults>
</compile_context>

<pallas_src>
import functools

import jax
import jax.numpy as jnp
from jax.experimental import pallas as pl
from jax.experimental.pallas import tpu as pltpu


def _round_up(v, m):
    return ((v + m - 1) // m) * m


def _cdiv(a, b):
    return (a + b - 1) // b


def _vmem_capacity_bytes():
    try:
        info = pltpu.get_tpu_info()
        cap = getattr(info, "vmem_capacity_bytes", None)
        if cap:
            return int(cap)
    except Exception:
        pass
    return 64 * 1024 * 1024  # conservative default (v7x per-TensorCore VMEM)


def _tap(x_ref, xh_ref, off):
    """(C_in, TL) input columns shifted right by `off`; halo supplies the tail."""
    if off == 0:
        return x_ref[...]
    return jnp.concatenate([x_ref[:, off:], xh_ref[:, :off]], axis=-1)


def _conv1d_kernel(x_ref, xh_ref, w_ref, b_ref, o_ref, *,
                   kernel_size, dilation, fold, precision):
    # x_ref : (C_in, TL)        current L tile of the (left-)padded input
    # xh_ref: (C_in, H)         halo: first H columns of the next L tile
    # w_ref : (C_out, K*C_in)   flattened weight, contraction on the lane axis
    # b_ref : (C_out, 1)        f32 bias
    # o_ref : (C_out, TL)       lane-dense output tile
    c_in = x_ref.shape[0]
    if fold:
        # Small C_in: fold all K taps into one deep MXU contraction
        #   (C_out, K*C_in) @ (K*C_in, TL)
        x_cat = jnp.concatenate(
            [_tap(x_ref, xh_ref, k * dilation) for k in range(kernel_size)],
            axis=0)
        acc = jnp.dot(w_ref[...], x_cat,
                      preferred_element_type=jnp.float32, precision=precision)
    else:
        # Large C_in (or unaligned channels): per-tap matmuls already saturate
        # the MXU depth; f32 accumulation, no K*C_in staging copy.
        acc = jnp.zeros(o_ref.shape, jnp.float32)
        for k in range(kernel_size):
            wk = w_ref[:, k * c_in:(k + 1) * c_in]               # (C_out, C_in)
            acc = acc + jnp.dot(wk, _tap(x_ref, xh_ref, k * dilation),
                                preferred_element_type=jnp.float32,
                                precision=precision)
    o_ref[...] = (acc + b_ref[...]).astype(o_ref.dtype)


def _conv1x1_kernel(x_ref, w_ref, b_ref, o_ref, *, precision):
    acc = jnp.dot(w_ref[...], x_ref[...],
                  preferred_element_type=jnp.float32, precision=precision)
    o_ref[...] = (acc + b_ref[...]).astype(o_ref.dtype)


def conv_norm_forward(x, weight, bias=None, *, stride=1, padding=None,
                      dilation=1, tl_target=1024, compute_dtype=jnp.bfloat16,
                      precision=None):
    """Pallas TPU implementation of ConvNorm.forward (torch.nn.Conv1d, stride=1).

    x: (N, C_in, L); weight: (C_out, C_in, K); bias: (C_out,) or None.
    compute_dtype: dtype of x/weight inside the kernel (default bf16; accumulation
    and bias stay f32, output keeps x.dtype). Pass jnp.float32 for exact f32 parity.
    """
    assert stride == 1, "only stride=1 implemented"
    # TODO(synk): stride > 1 would need strided output indexing; not implemented.
    n, c_in, length = x.shape
    c_out, c_in_w, k = weight.shape
    assert c_in == c_in_w

    if padding is None:
        assert k % 2 == 1
        padding = int(dilation * (k - 1) / 2)

    halo = dilation * (k - 1)
    l_out = length + 2 * padding - halo          # stride == 1
    assert l_out > 0

    out_dtype = x.dtype
    if compute_dtype is None:
        compute_dtype = x.dtype
    isz = jnp.dtype(compute_dtype).itemsize

    if bias is None:
        bias = jnp.zeros((c_out,), jnp.float32)
    b2 = bias.astype(jnp.float32).reshape(c_out, 1)

    vmem_cap = _vmem_capacity_bytes()
    budget = max(min(int(vmem_cap * 0.8), 100 * 1024 * 1024), 32 * 1024 * 1024)

    # ------------------------------------------------------------------ K == 1
    if k == 1:
        # 1x1 fast path: no halo block, no padded HBM copy (unless padding != 0).
        x_in = jnp.pad(x, ((0, 0), (0, 0), (padding, padding))) if padding else x
        w_flat = weight.reshape(c_out, c_in).astype(compute_dtype)
        x_in = x_in.astype(compute_dtype)

        unit = 128
        tl = min(tl_target, _round_up(l_out, unit))
        tl = _round_up(max(tl, unit), unit)
        if n == 1:  # keep >= 2 grid steps so both v7x TensorCores get work
            tl = max(unit, min(tl, _round_up(_cdiv(l_out, 2), unit)))

        def est1(t):
            return (2 * (c_in * t + c_out * t) * isz
                    + c_out * c_in * isz + c_out * 4
                    + c_in * t * isz + c_out * t * 4)

        while est1(tl) > budget and tl > unit:
            tl = max(unit, _round_up(tl // 2, unit))
        nt = _cdiv(l_out, tl)
        vmem_limit = int(min(max(int(1.5 * est1(tl)), 32 * 1024 * 1024),
                             int(vmem_cap * 0.9)))

        kernel = functools.partial(_conv1x1_kernel, precision=precision)
        return pl.pallas_call(
            kernel,
            out_shape=jax.ShapeDtypeStruct((n, c_out, l_out), out_dtype),
            grid=(n, nt),
            in_specs=[
                pl.BlockSpec((None, c_in, tl), lambda i, l: (i, 0, l)),
                pl.BlockSpec((c_out, c_in), lambda i, l: (0, 0)),
                pl.BlockSpec((c_out, 1), lambda i, l: (0, 0)),
            ],
            out_specs=pl.BlockSpec((None, c_out, tl), lambda i, l: (i, 0, l)),
            compiler_params=pltpu.CompilerParams(
                dimension_semantics=("parallel", "parallel"),
                vmem_limit_bytes=vmem_limit),
        )(x_in, w_flat, b2)

    # ------------------------------------------------------------------ K > 1
    hblk = _round_up(halo, 128)                  # halo block, >= 128 lanes
    # Fold taps into one contraction only for small, sublane-aligned C_in;
    # large C_in already saturates MXU depth per tap and the K*C_in staging
    # copy would just burn vld/vst slots and VMEM.
    fold = ((c_in * isz) % 32 == 0) and (c_in < 256)

    tl = min(tl_target, _round_up(l_out, hblk))
    tl = _round_up(max(tl, hblk), hblk)
    if n == 1:  # keep >= 2 L tiles so both v7x TensorCores get work
        tl = max(hblk, min(tl, _round_up(_cdiv(l_out, 2), hblk)))

    def est(t, f):
        blk = (c_in * t + c_in * hblk + c_out * t) * isz          # streaming blocks
        w_b = c_out * k * c_in * isz + c_out * 4                  # resident weight/bias
        if f:
            tmp = 2 * k * c_in * t * isz + c_out * t * 4          # x_cat + pieces + acc
        else:
            tmp = 2 * c_in * t * isz + c_out * t * 4              # tap temp + acc
        return 2 * blk + w_b + tmp                                # 2x = double buffering

    while est(tl, fold) > budget and tl > hblk:
        tl = max(hblk, _round_up(tl // 2, hblk))
    if fold and est(tl, fold) > budget:
        fold = False                                              # drop staging copy

    nt = _cdiv(l_out, tl)
    r = tl // hblk
    lp = nt * tl + hblk                                           # padded input length

    # Left "same" padding shifts the whole tile grid, which blocked index maps
    # cannot express; keep one padded copy of x in HBM.
    # TODO(synk): fold the edge padding into the kernel (pl.Element offsets or a
    # manual DMA from an ANY-space x) to remove this extra HBM pass.
    right_pad = lp - length - padding
    x_pad = jnp.pad(x, ((0, 0), (0, 0), (padding, right_pad))).astype(compute_dtype)

    # Weight: (C_out, C_in, K) -> (C_out, K*C_in); contraction lives on lanes.
    w_flat = jnp.transpose(weight, (0, 2, 1)).reshape(c_out, k * c_in)
    w_flat = w_flat.astype(compute_dtype)

    kernel = functools.partial(_conv1d_kernel, kernel_size=k, dilation=dilation,
                               fold=fold, precision=precision)
    vmem_limit = int(min(max(int(1.5 * est(tl, fold)), 32 * 1024 * 1024),
                         int(vmem_cap * 0.9)))

    return pl.pallas_call(
        kernel,
        out_shape=jax.ShapeDtypeStruct((n, c_out, l_out), out_dtype),
        grid=(n, nt),
        in_specs=[
            # current L tile of x (batch dim squeezed out of the kernel Ref)
            # TODO(synk): pipeline_mode=pl.Buffered(3) may help tiny-C_in shapes.
            pl.BlockSpec((None, c_in, tl), lambda i, l: (i, 0, l)),
            # halo: first H columns of the next tile (same array, small block)
            pl.BlockSpec((None, c_in, hblk), lambda i, l: (i, 0, (l + 1) * r)),
            # weight / bias: constant index maps -> VMEM-resident across the grid
            pl.BlockSpec((c_out, k * c_in), lambda i, l: (0, 0)),
            pl.BlockSpec((c_out, 1), lambda i, l: (0, 0)),
        ],
        out_specs=pl.BlockSpec((None, c_out, tl), lambda i, l: (i, 0, l)),
        compiler_params=pltpu.CompilerParams(
            dimension_semantics=("parallel", "parallel"),
            vmem_limit_bytes=vmem_limit),
    )(x_pad, x_pad, w_flat, b2)


def init_conv_norm_params(key, in_channels, out_channels, kernel_size,
                          w_init_gain="linear"):
    """Deterministic xavier_uniform init matching the PyTorch module."""
    k_w, k_b = jax.random.split(key)
    gain = 1.0  # calculate_gain('linear') == 1.0
    fan_in = in_channels * kernel_size
    fan_out = out_channels * kernel_size
    bound = gain * (6.0 / (fan_in + fan_out)) ** 0.5
    weight = jax.random.uniform(
        k_w, (out_channels, in_channels, kernel_size),
        minval=-bound, maxval=bound, dtype=jnp.float32)
    # PyTorch Conv1d default bias init: U(-1/sqrt(fan_in), 1/sqrt(fan_in))
    b_bound = 1.0 / (fan_in ** 0.5)
    bias = jax.random.uniform(
        k_b, (out_channels,), minval=-b_bound, maxval=b_bound, dtype=jnp.float32)
    return weight, bias


if __name__ == "__main__":
    key = jax.random.PRNGKey(0)
    k_x1, k_p1, k_x2, k_p2, k_x3, k_p3 = jax.random.split(key, 6)

    def conv_ref(x, w, b, dilation=1, padding=None):
        co, ks = w.shape[0], w.shape[2]
        if padding is None:
            padding = dilation * (ks - 1) // 2
        y = jax.lax.conv_general_dilated(
            x, w, window_strides=(1,), padding=[(padding, padding)],
            rhs_dilation=(dilation,), dimension_numbers=("NCH", "OIH", "NCH"),
            precision=jax.lax.Precision.HIGHEST)
        return y + b.reshape(1, co, 1)

    # --- Test 1: small shapes, K=3 — per-tap fallback path, f32 compute -------
    batch, c_in, c_out, length, ksize = 2, 4, 8, 16, 3
    x = jax.random.normal(k_x1, (batch, c_in, length), dtype=jnp.float32)
    weight, bias = init_conv_norm_params(k_p1, c_in, c_out, ksize)
    out = jax.block_until_ready(
        conv_norm_forward(x, weight, bias, compute_dtype=jnp.float32))
    ref = conv_ref(x, weight, bias)
    assert out.shape == (batch, c_out, length)
    assert jnp.allclose(out, ref, atol=1e-4, rtol=1e-4)

    # --- Test 2: folded path, dilation>1, multiple L tiles, f32 compute -------
    b2_, ci2, co2, len2, ks2, dil2 = 2, 16, 32, 300, 5, 2
    x2 = jax.random.normal(k_x2, (b2_, ci2, len2), dtype=jnp.float32)
    w2, bb2 = init_conv_norm_params(k_p2, ci2, co2, ks2)
    out2 = jax.block_until_ready(
        conv_norm_forward(x2, w2, bb2, dilation=dil2, tl_target=256,
                          compute_dtype=jnp.float32))
    ref2 = conv_ref(x2, w2, bb2, dilation=dil2)
    assert out2.shape == ref2.shape
    assert jnp.allclose(out2, ref2, atol=1e-4, rtol=1e-4)

    # --- Test 3: default bf16 compute (f32 accumulation) on the same shapes ---
    out3 = jax.block_until_ready(
        conv_norm_forward(x2, w2, bb2, dilation=dil2, tl_target=256))
    assert out3.shape == ref2.shape
    assert jnp.allclose(out3, ref2, atol=5e-2, rtol=5e-2)

    # --- Test 4: K=1 fast path, batch=1 (forces nt>=2 megacore split), f32 ----
    ci4, co4, len4 = 8, 16, 300
    x4 = jax.random.normal(k_x3, (1, ci4, len4), dtype=jnp.float32)
    w4, b4 = init_conv_norm_params(k_p3, ci4, co4, 1)
    out4 = jax.block_until_ready(
        conv_norm_forward(x4, w4, b4, compute_dtype=jnp.float32))
    ref4 = conv_ref(x4, w4, b4)
    assert out4.shape == ref4.shape
    assert jnp.allclose(out4, ref4, atol=1e-4, rtol=1e-4)

    print("KERNEL_OK")
</pallas_src>

<mosaic_0001>
module attributes {stable_mosaic.version = 11 : i64} {
  func.func @_conv1d_kernel(%arg0: i32, %arg1: i32, %arg2: memref<1x4x128xf32, #tpu.memory_space<vmem>>, %arg3: memref<1x4x128xf32, #tpu.memory_space<vmem>>, %arg4: memref<8x12xf32, #tpu.memory_space<vmem>>, %arg5: memref<8x1xf32, #tpu.memory_space<vmem>>, %arg6: memref<1x8x128xf32, #tpu.memory_space<vmem>>) attributes {dimension_semantics = [#tpu.dimension_semantics<parallel>, #tpu.dimension_semantics<parallel>], iteration_bounds = array<i64: 2, 1>, scalar_prefetch = 0 : i64, scratch_operands = 0 : i64, tpu.core_type = #tpu.core_type<tc>, window_params = [{transform_indices = @transform_0, window_bounds = array<i64: 1, 4, 128>}, {transform_indices = @transform_1, window_bounds = array<i64: 1, 4, 128>}, {pipeline_mode = #tpu.pipeline_mode<synchronous>, transform_indices = @transform_2, window_bounds = array<i64: 8, 12>}, {pipeline_mode = #tpu.pipeline_mode<synchronous>, transform_indices = @transform_3, window_bounds = array<i64: 8, 1>}, {transform_indices = @transform_4, window_bounds = array<i64: 1, 8, 128>}]} {
    %cst = arith.constant 0.000000e+00 : f32
    %0 = vector.broadcast %cst : f32 to vector<8x128xf32>
    %c0 = arith.constant 0 : index
    %c0_0 = arith.constant 0 : index
    %1 = vector.load %arg4[%c0, %c0_0] : memref<8x12xf32, #tpu.memory_space<vmem>>, vector<8x4xf32>
    %c0_1 = arith.constant 0 : index
    %c0_2 = arith.constant 0 : index
    %c0_3 = arith.constant 0 : index
    %2 = vector.load %arg2[%c0_1, %c0_2, %c0_3] : memref<1x4x128xf32, #tpu.memory_space<vmem>>, vector<1x4x128xf32>
    %3 = vector.shape_cast %2 : vector<1x4x128xf32> to vector<4x128xf32>
    %cst_4 = arith.constant dense<0.000000e+00> : vector<8x128xf32>
    %4 = tpu.matmul %1, %3, %cst_4 {dimension_numbers = #tpu.dot_dimension_numbers<[1], [0], [0], [1], [0, 0, 1, 1], [], []>} : vector<8x4xf32>, vector<4x128xf32>, vector<8x128xf32> -> vector<8x128xf32>
    %5 = arith.addf %0, %4 : vector<8x128xf32>
    %c0_5 = arith.constant 0 : index
    %c4 = arith.constant 4 : index
    %6 = vector.load %arg4[%c0_5, %c4] : memref<8x12xf32, #tpu.memory_space<vmem>>, vector<8x4xf32>
    %c0_6 = arith.constant 0 : index
    %c0_7 = arith.constant 0 : index
    %c1 = arith.constant 1 : index
    %7 = vector.load %arg2[%c0_6, %c0_7, %c1] : memref<1x4x128xf32, #tpu.memory_space<vmem>>, vector<1x4x127xf32>
    %8 = vector.shape_cast %7 : vector<1x4x127xf32> to vector<4x127xf32>
    %c0_8 = arith.constant 0 : index
    %c0_9 = arith.constant 0 : index
    %c0_10 = arith.constant 0 : index
    %9 = vector.load %arg3[%c0_8, %c0_9, %c0_10] : memref<1x4x128xf32, #tpu.memory_space<vmem>>, vector<1x4x1xf32>
    %10 = vector.shape_cast %9 : vector<1x4x1xf32> to vector<4x1xf32>
    %11 = tpu.concatenate %8, %10 in 1 : vector<4x127xf32>, vector<4x1xf32> -> vector<4x128xf32>
    %cst_11 = arith.constant dense<0.000000e+00> : vector<8x128xf32>
    %12 = tpu.matmul %6, %11, %cst_11 {dimension_numbers = #tpu.dot_dimension_numbers<[1], [0], [0], [1], [0, 0, 1, 1], [], []>} : vector<8x4xf32>, vector<4x128xf32>, vector<8x128xf32> -> vector<8x128xf32>
    %13 = arith.addf %5, %12 : vector<8x128xf32>
    %c0_12 = arith.constant 0 : index
    %c8 = arith.constant 8 : index
    %14 = vector.load %arg4[%c0_12, %c8] : memref<8x12xf32, #tpu.memory_space<vmem>>, vector<8x4xf32>
    %c0_13 = arith.constant 0 : index
    %c0_14 = arith.constant 0 : index
    %c2 = arith.constant 2 : index
    %15 = vector.load %arg2[%c0_13, %c0_14, %c2] : memref<1x4x128xf32, #tpu.memory_space<vmem>>, vector<1x4x126xf32>
    %16 = vector.shape_cast %15 : vector<1x4x126xf32> to vector<4x126xf32>
    %c0_15 = arith.constant 0 : index
    %c0_16 = arith.constant 0 : index
    %c0_17 = arith.constant 0 : index
    %17 = vector.load %arg3[%c0_15, %c0_16, %c0_17] : memref<1x4x128xf32, #tpu.memory_space<vmem>>, vector<1x4x2xf32>
    %18 = vector.shape_cast %17 : vector<1x4x2xf32> to vector<4x2xf32>
    %19 = tpu.concatenate %16, %18 in 1 : vector<4x126xf32>, vector<4x2xf32> -> vector<4x128xf32>
    %cst_18 = arith.constant dense<0.000000e+00> : vector<8x128xf32>
    %20 = tpu.matmul %14, %19, %cst_18 {dimension_numbers = #tpu.dot_dimension_numbers<[1], [0], [0], [1], [0, 0, 1, 1], [], []>} : vector<8x4xf32>, vector<4x128xf32>, vector<8x128xf32> -> vector<8x128xf32>
    %21 = arith.addf %13, %20 : vector<8x128xf32>
    %c0_19 = arith.constant 0 : index
    %c0_20 = arith.constant 0 : index
    %22 = vector.load %arg5[%c0_19, %c0_20] : memref<8x1xf32, #tpu.memory_space<vmem>>, vector<8x1xf32>
    %23 = vector.broadcast %22 : vector<8x1xf32> to vector<8x128xf32>
    %24 = arith.addf %21, %23 : vector<8x128xf32>
    %c0_21 = arith.constant 0 : index
    %c0_22 = arith.constant 0 : index
    %c0_23 = arith.constant 0 : index
    %25 = vector.load %arg6[%c0_21, %c0_22, %c0_23] : memref<1x8x128xf32, #tpu.memory_space<vmem>>, vector<1x8x128xf32>
    %26 = vector.shape_cast %25 : vector<1x8x128xf32> to vector<8x128xf32>
    %27 = vector.shape_cast %24 : vector<8x128xf32> to vector<1x8x128xf32>
    tpu.vector_store %arg6[%c0_21, %c0_22, %c0_23], %27 {strides = array<i32>} : memref<1x8x128xf32, #tpu.memory_space<vmem>>, vector<1x8x128xf32>,
    return
  }
  func.func @transform_0(%arg0: i32, %arg1: i32) -> (i32, i32, i32) {
    %c0_i32 = arith.constant 0 : i32
    %c0_i32_0 = arith.constant 0 : i32
    return %arg0, %c0_i32, %arg1 : i32, i32, i32
  }
  func.func @transform_1(%arg0: i32, %arg1: i32) -> (i32, i32, i32) {
    %c1_i32 = arith.constant 1 : i32
    %0 = arith.addi %arg1, %c1_i32 : i32
    %c1_i32_0 = arith.constant 1 : i32
    %1 = arith.muli %0, %c1_i32_0 : i32
    %c0_i32 = arith.constant 0 : i32
    %c0_i32_1 = arith.constant 0 : i32
    return %arg0, %c0_i32, %1 : i32, i32, i32
  }
  func.func @transform_2(%arg0: i32, %arg1: i32) -> (i32, i32) {
    %c0_i32 = arith.constant 0 : i32
    %c0_i32_0 = arith.constant 0 : i32
    %c0_i32_1 = arith.constant 0 : i32
    return %c0_i32, %c0_i32_0 : i32, i32
  }
  func.func @transform_3(%arg0: i32, %arg1: i32) -> (i32, i32) {
    %c0_i32 = arith.constant 0 : i32
    %c0_i32_0 = arith.constant 0 : i32
    %c0_i32_1 = arith.constant 0 : i32
    return %c0_i32, %c0_i32_0 : i32, i32
  }
  func.func @transform_4(%arg0: i32, %arg1: i32) -> (i32, i32, i32) {
    %c0_i32 = arith.constant 0 : i32
    %c0_i32_0 = arith.constant 0 : i32
    return %arg0, %c0_i32, %arg1 : i32, i32, i32
  }
}

</mosaic_0001>

<bundles_post_ra>
// kernel: tpu_custom_call.1
= control target key start
LH: loop header
LB: loop body
LE: loop exit
PB: predicated region body
PF: predicated region fallthrough
CT: control target
= control target key end

     0   :  { %s941_s0 = inlined_call_operand.hbm [shape: f32[2,4,256], index: 0, kind: input, shape index: {}]   ;;  %s942_s1 = inlined_call_operand.hbm [shape: f32[2,4,256], index: 1, kind: input, shape index: {}]   ;;  %s943_s2 = inlined_call_operand.vmem [shape: f32[8,12], index: 2, kind: input, shape index: {}]   ;;  %s944_s3 = inlined_call_operand.vmem [shape: f32[8,1], index: 3, kind: input, shape index: {}]   ;;  %s945_s4 = inlined_call_operand.hbm [shape: f32[2,8,16], index: 4, kind: output, shape index: {}]  }
   0x1   :  { %946 = sst [smem:[#allocation11_spill]] %s941_s0 }
   0x2   :  { %9 = vsyncpa [#allocation3], 0 }
   0x3   :  { %11 = vsyncpa [#allocation3 + $0x1], 0 }
   0x4   :  { %12 = vsyncpa [#allocation6], 0 }
   0x5   :  { %14 = vsyncpa [#allocation6 + $0x1], 0 }
   0x6   :  { %15 = vsyncpa [#allocation4], 0 }
   0x7   :  { %17 = vsyncpa [#allocation4 + $0x1], 0  ;;  %s792_s15 = smov 0   ;;  %s794_s16 = smov 0  }
   0x8   :  { %s796_s17 = smov 0   ;;  %s798_s18 = smov 0  }
   0x9   :  { %s800_s19 = smov 0   ;;  %s802_s20 = smov 0  }
   0xa LB: > { %s515_s21 = sadd.s32 4294967295, %s760_s20   ;;  %s516_s22 = sadd.s32 4294967294, %s760_s20   ;;  %s760_s20 = sphi %s802_s20, %s23_s20   ;;  %s756_s19 = sphi %s800_s19, %s957_s19   ;;  %s752_s18 = sphi %s798_s18, %s956_s18   ;;  %s748_s17 = sphi %s796_s17, %s955_s17   ;;  %s744_s16 = sphi %s794_s16, %s954_s16   ;;  %s740_s15 = sphi %s792_s15, %s953_s15  }
   0xb   : > { %s35_s23 = sadd.s32 1, %s756_s19  ;;  %s44_s24 = sadd.s32 1, %s748_s17 }
   0xc   : > { %p37_p0 = scmp.ge.s32.totalorder %s35_s23, 2  ;;  %p51_p1 = scmp.ne.s32.totalorder %s748_s17, %s744_s16 }
   0xd   : > { %p52_p2 = scmp.eq.s32.totalorder %s760_s20, 0  ;;  %p57_p3 = scmp.ne.s32.totalorder %s744_s16, %s740_s15 }
   0xe   : > { %s959_s23 = smov (%p37_p0, %s35_s23), 0  ;;  %p58_p5 = scmp.eq.s32.totalorder %s515_s21, 0 }
   0xf   : > { %p833_p4 = por %p52_p2, %p51_p1  ;;  %s39_s26 = ssub.s32 %s756_s19, %s959_s23 }
  0x10   : > { %p155_p6 = scmp.eq.s32.totalorder %s515_s21, 1  ;;  %p42_p7 = scmp.eq.s32.totalorder %s39_s26, 0 }
  0x11   : > { %p839_p8 = por %p58_p5, %p57_p3  ;;  %p161_p10 = scmp.eq.s32.totalorder %s516_s22, 1 }
  0x12   : > { %p843_p9 = por %p155_p6, %p51_p1  ;;  %p518_p12 = scmp.ge.s32.totalorder %s760_s20, 2 }
  0x13   : > { %s848_s29 = scalar_select %p42_p7, %s748_s17, %s44_s24  }
  0x14   : > { %p850_p11 = por %p161_p10, %p57_p3  ;;  %p558_p13 = scmp.lt.s32.totalorder %s760_s20, 2 }
  0x15   : > { %s187_s5 = sand.u32 1, %s748_s17   ;;  %s539_s7 = sshll.u32 %s756_s19, 3 }
  0x16   : > { %s519_s6 = sshll.u32 %s187_s5, 2  ;;  %s951_s0 = sld [smem:[#allocation11_spill]] }
  0x17   : > { %s191_s11 = scalar_lea.vmem [#allocation2], %s519_s6  ;;  %p863_p0 = pnand %p558_p13, %p833_p4 }
  0x18   : > { %s201_s12 = sshll.u32 %s191_s11, 4  ;;  %p525_p1 = scmp.ge.s32.totalorder %s760_s20, 1  ;;  %s202_s12 = int_to_ptr.vmem [resolvable:$true] %s201_s12 }
  0x19   : > { %p228_p2 = scmp.lt.s32.totalorder %s760_s20, 3  ;;  %s188_s21 = scalar_lea.sflag [#allocation3], %s187_s5 }
  0x1a   : > { %s448_s26 = scalar_lea.hbm %s942_s1, %s539_s7  ;;  %s212_s8 = scalar_lea.vmem [#allocation5], %s519_s6 }
  0x1b   : > { %p229_p3 = pnand %p525_p1, %p228_p2  ;;  %s223_s9 = sshll.u32 %s212_s8, 4  ;;  %s224_s9 = int_to_ptr.vmem [resolvable:$true] %s223_s9 }
  0x1c   : > { %s197_s10 = scalar_lea.hbm %s951_s0, %s539_s7  ;;  %s209_s11 = scalar_lea.sflag [#allocation6], %s187_s5 }
  0x1d   : > { %s199_s13 = sshll.u32 %s197_s10, 4  ;;  %s449_s10 = scalar_lea.hbm %s448_s26, 4  ;;  %s200_s13 = int_to_ptr.hbm [resolvable:$true] %s199_s13 }
  0x1e   : > { %550 = dma.hbm_to_vmem [thread:$0]  (!%p863_p0), %s200_s13, 64, %s202_s12, %s188_s21  }
  0x1f   : > { %s221_s25 = sshll.u32 %s449_s10, 4  ;;  %232 = sbr.rel (%p229_p3) target bundleno = 304 (0x130), region = 36  ;;  %s222_s25 = int_to_ptr.hbm [resolvable:$true] %s221_s25 }
  0x20   : > { %553 = dma.hbm_to_vmem [thread:$0]  (!%p863_p0), %s222_s25, 64, %s224_s9, %s209_s11  }
  0x21   : > { %s877_s0 = sand.u32 (!%p229_p3), 1, %s744_s16  }
  0x22   : > { %s526_s12 = sshll.u32 (!%p229_p3), %s877_s0, 2  ;;  %s235_s13 = scalar_lea.sflag (!%p229_p3), [#allocation3], %s877_s0 }
  0x23   : > { %s238_s21 = scalar_lea.vmem (!%p229_p3), [#allocation2], %s526_s12 }
  0x24   : > { %727 = dma.done.wait (%p839_p8), %s235_s13, 64  }
  0x25   : > { %729 = vsyncadd (%p839_p8), %s235_s13, 4294967232  ;;  %s245_s5 = scalar_lea.sflag [#allocation6], %s877_s0  ;;  %s248_s6 = scalar_lea.vmem [#allocation5], %s526_s12 }
  0x26   : > { %731 = dma.done.wait (%p839_p8), %s245_s5, 64  }
  0x27   : > { %733 = vsyncadd (%p839_p8), %s245_s5, 4294967232  ;;  %v281_v0 = vld [vmem:[%s238_s21] sm:$0xf]  ;;  %s762_s22 = smov 126   ;;  %s763_s24 = smov 120   ;;  %vm299_vm0 = vcmask 1043456  }
  0x28   : > { %v280_v1 = vld [vmem:[%s943_s2] sm:$0xff]  ;;  %347 = vrot.lane.b32.xlu0 %v281_v0, %s762_s22  ;;  %v282_v2 = vld [vmem:[%s248_s6] sm:$0xf]  ;;  %s764_s26 = smov 127   ;;  %s765_s8 = smov 124   ;;  %vm296_vm1 = vcmask 31744   ;;  %531 = vmatpush.msk.msra.mxu1 %vm299_vm0, %v281_v0 }
  0x29   : > { %355 = vrot.lane.b32.xlu1 %v280_v1, %s763_s24  ;;  %288 = vrot.lane.b32.xlu2 %v282_v2, %s764_s26  ;;  %v383_v3 = vld [vmem:[%s944_s3] sm:$0xff]  ;;  %v766_v4 = vmov 0   ;;  %vm291_vm2 = vcmask 1039360   ;;  %vm353_vm3 = vcmask 1031168   ;;  %s528_s10 = sshll.u32 %s877_s0, 3  ;;  %s536_s25 = sshll.u32 %s752_s18, 3 }
  0x2a   : > { %532 = vmatmul.msk.f32.vlgmr.msra.gmra.mxu1 %vm296_vm1, %v280_v1  ;;  %613 = vset.pattern.permute.xlu0 %v766_v4  ;;  %s403_s13 = scalar_lea.hbm %s945_s4, %s536_s25  ;;  %s278_s21 = scalar_lea.vmem [#allocation7], %s528_s10 }
  0x2b   : > { %s405_s5 = sshll.u32 %s278_s21, 4  ;;  %s407_s6 = sshll.u32 %s403_s13, 4  ;;  %s406_s5 = int_to_ptr.vmem [resolvable:$true] %s405_s5  ;;  %s408_s6 = int_to_ptr.hbm [resolvable:$true] %s407_s6 }
  0x2c   : > { %s392_s7 = scalar_lea.sflag [#allocation4], %s877_s0  ;;  %s688_s14 = sshra.s32 %s408_s6, 4  ;;  %s689_s14 = int_to_ptr.hbm [resolvable:$true] %s688_s14 }
  0x2d   : > { %s690_s18 = scalar_lea.hbm %s689_s14, 8  ;;  %p695_p7 = scmp.lt.s32.totalorder %s689_s14, %s945_s4 }
  0x2e   : > { %p691_p4 = scmp.ne.s32.totalorder %s689_s14, %s690_s18 }
  0x30   : > { %350 = vrot.lane.b32.xlu0 %v282_v2, %s762_s22  ;;  %p692_p5 = pnand %p691_p4, %p843_p9 }
  0x31   : > { %284 = vrot.lane.b32.xlu1 %v281_v0, %s764_s26  ;;  %294 = vrot.lane.b32.xlu2 %v280_v1, %s765_s8  ;;  %s694_s26 = scalar_lea.hbm %s945_s4, 16 }
  0x32   : > { %p693_p6 = pneg %p692_p5  ;;  %p696_p8 = scmp.lt.s32.totalorder %s694_s26, %s690_s18 }
  0x34   : > { %p697_p10 = por %p696_p8, %p695_p7 }
  0x36   : > { %p698_p13 = pnand %p697_p10, %p693_p6 }
  0x38   : > { %386 = vperm.xlu0 %613, %v383_v3  }
  0x83   : > { %v289_v5 = vpop.permute.xlu2 %288 }
  0x8b   : > { %v295_v8 = vpop.permute.xlu2 %294 }
  0x9a   : > { %v348_v6 = vpop.permute.xlu0 %347 }
  0x9b   : > { %v356_v7 = vpop.permute.xlu1 %355 }
  0xa2   : > { %v351_v9 = vpop.permute.xlu0 %350 }
  0xa3   : > { %v285_v10 = vpop.permute.xlu1 %284  ;;  %v354_v12 = vsel %vm353_vm3, %v348_v6, %v351_v9 }
  0xa4   : > { %v292_v11 = vsel %vm291_vm2, %v285_v10, %v289_v5  ;;  %533 = vmatpush.msk.msra.mxu2 %vm299_vm0, %v354_v12 }
  0xa5   : > { %529 = vmatpush.msk.msra.mxu0 %vm299_vm0, %v292_v11  ;;  %534 = vmatmul.msk.f32.vlgmr.msra.gmra.mxu2 %vm296_vm1, %v356_v7 }
  0xa6   : > { %530 = vmatmul.msk.f32.vlgmr.msra.gmra.mxu0 %vm296_vm1, %v295_v8 }
  0xa7   : > { %v344_v14 = vpop.f32.mrf.mxu1 }
  0xaa   : > { %v387_v17 = vpop.permute.xlu0 %386 }
 0x123   : > { %v320_v13 = vpop.f32.mrf.mxu0 }
 0x124   : > { %v345_v15 = vadd.f32 %v344_v14, %v320_v13 }
 0x128   : > { %v379_v16 = vpop.f32.mrf.mxu2 }
 0x129   : > { %v382_v18 = vadd.f32 %v379_v16, %v345_v15 }
 0x12b   : > { %v389_v19 = vadd.f32 %v387_v17, %v382_v18 }
 0x12d   : > { %390 = vst [vmem:[%s278_s21] sm:$0xff] %v389_v19 }
 0x12e   : > { %701 = shalt.err (!%p698_p13)
}
 0x12f   : > { %545 = dma.vmem_to_hbm [thread:$0]  (%p843_p9), %s406_s5, 128, %s408_s6, %s392_s7  }
 0x130 PF: > { %s419_s0 = sand.u32 1, %s740_s15   ;;  %p555_p0 = pnand %p518_p12, %p850_p11 }
 0x131   : > { %s420_s9 = scalar_lea.sflag [#allocation4], %s419_s0 }
 0x132   : > { %p556_p1 = pneg %p555_p0 }
 0x134   : > { %735 = dma.done.wait (%p556_p1), %s420_s9, 128  }
 0x135   : > { %737 = vsyncadd (%p556_p1), %s420_s9, 4294967168  ;;  %s23_s20 = sadd.s32 1, %s760_s20   ;;  %s953_s15 = smov %s744_s16 }
 0x136   : > { %p20_p2 = scmp.ge.s32.totalorder %s23_s20, 4   ;;  %s954_s16 = smov %s748_s17 }
 0x137   : > { %s955_s17 = smov %s848_s29  ;;  %s956_s18 = smov %s756_s19 }
 0x138   : > { %s957_s19 = smov %s959_s23  ;;  %22 = sbr.rel (!%p20_p2) target bundleno = 10 (0xa), region = 94 }
 0x13d   :  { %426 = vsyncpa [#allocation3], 1 }
 0x13e   :  { %428 = vsyncpa [#allocation3 + $0x1], 1 }
 0x13f   :  { %429 = vsyncpa [#allocation6], 1 }
 0x140   :  { %431 = vsyncpa [#allocation6 + $0x1], 1 }
 0x141   :  { %432 = vsyncpa [#allocation4], 1 }
 0x142   :  { %434 = vsyncpa [#allocation4 + $0x1], 1 }

</bundles_post_ra>
